<compile_context>
chip_gen: v6e
topology: v6e:2x2x1
jax: 0.10.0
libtpu: 0.0.40
codegen_flags: <defaults>
</compile_context>

<pallas_src>
import functools

import jax
import jax.numpy as jnp
from jax import lax
from jax.experimental import pallas as pl
from jax.experimental.pallas import tpu as pltpu


_VMEM_LIMIT = 64 * 1024 * 1024


def _cparams(sem):
    return pltpu.CompilerParams(dimension_semantics=sem,
                                vmem_limit_bytes=_VMEM_LIMIT)


def _seq_tile(n, cap=1024):
    """Largest row tile (multiple of 16, falling back to 8) dividing n, <= cap."""
    for step in (16, 8):
        if n % step == 0:
            t = (min(n, cap) // step) * step
            while t > 0 and n % t:
                t -= step
            if t > 0:
                return t
    raise ValueError("h*w must be a multiple of 8")


# --------------------------------------------------------------------------
# Kernel: fused Q/K and V projection (input read once, two MXU dots,
# lane-dense [TN, 2*hd] store for QK).
# --------------------------------------------------------------------------
def _qkv_proj_kernel(x_ref, wqk_ref, wv_ref, qk_ref, v_ref):
    x = x_ref[...]
    qk_ref[...] = jnp.dot(x, wqk_ref[...],
                          preferred_element_type=jnp.float32).astype(qk_ref.dtype)
    v_ref[...] = jnp.dot(x, wv_ref[...],
                         preferred_element_type=jnp.float32).astype(v_ref.dtype)


def qkv_proj(x, wqk, wv, tn):
    M, C = x.shape
    nqk, nv = wqk.shape[1], wv.shape[1]
    return pl.pallas_call(
        _qkv_proj_kernel,
        out_shape=(jax.ShapeDtypeStruct((M, nqk), jnp.bfloat16),
                   jax.ShapeDtypeStruct((M, nv), jnp.bfloat16)),
        grid=(M // tn,),
        in_specs=[pl.BlockSpec((tn, C), lambda i: (i, 0)),
                  pl.BlockSpec((C, nqk), lambda i: (0, 0)),
                  pl.BlockSpec((C, nv), lambda i: (0, 0))],
        out_specs=[pl.BlockSpec((tn, nqk), lambda i: (i, 0)),
                   pl.BlockSpec((tn, nv), lambda i: (i, 0))],
        compiler_params=_cparams(("parallel",)),
    )(x, wqk, wv)


# --------------------------------------------------------------------------
# Kernel: attention pass 1 — accumulate K^T.Q and per-column sum-of-squares
# over n-tiles, finalize block-diagonal softmax -> attn [hd, hd] per batch.
# --------------------------------------------------------------------------
def _attn_stats_kernel(qk_ref, smat_ref, bmat_ref, attn_ref,
                       acc_ref, qss_ref, kss_ref, *, hd):
    j = pl.program_id(1)

    @pl.when(j == 0)
    def _():
        acc_ref[...] = jnp.zeros_like(acc_ref)
        qss_ref[...] = jnp.zeros_like(qss_ref)
        kss_ref[...] = jnp.zeros_like(kss_ref)

    qk = qk_ref[...]                       # [TN, 2*hd] bf16
    q = qk[:, :hd]
    k = qk[:, hd:]
    qf = q.astype(jnp.float32)
    kf = k.astype(jnp.float32)
    qss_ref[...] += jnp.sum(qf * qf, axis=0, keepdims=True)
    kss_ref[...] += jnp.sum(kf * kf, axis=0, keepdims=True)
    # acc[i, j] += sum_n k[n, i] * q[n, j]
    acc_ref[...] += lax.dot_general(k, q, (((0,), (0,)), ((), ())),
                                    preferred_element_type=jnp.float32)

    @pl.when(j == pl.num_programs(1) - 1)
    def _():
        # F.normalize(dim=n, p=2, eps=1e-12) == rsqrt(max(ssq, 1e-24)) scaling.
        inv_q = lax.rsqrt(jnp.maximum(qss_ref[...], 1e-24))    # [1, hd]
        inv_k = lax.rsqrt(jnp.maximum(kss_ref[...], 1e-24))    # [1, hd]
        a = acc_ref[...] * inv_q                               # column scale (q)
        ridx = lax.broadcasted_iota(jnp.int32, (hd, hd), 0)
        cidx = lax.broadcasted_iota(jnp.int32, (hd, hd), 1)
        # row-scale by inv_k via diag(inv_k) @ a (avoids a [hd,1] relayout)
        diag_k = jnp.where(ridx == cidx, inv_k, 0.0)
        a = jnp.dot(diag_k, a, preferred_element_type=jnp.float32)
        # per-head rescale + block-diagonal mask (precomputed host-side)
        a = a * smat_ref[...] + bmat_ref[...]
        a = a - jnp.max(a, axis=-1, keepdims=True)
        a = jnp.exp(a)
        attn_ref[...] = (a / jnp.sum(a, axis=-1, keepdims=True)).astype(attn_ref.dtype)


def attn_stats(qk, smat, bmat, b, n, tn, hd):
    nt = n // tn
    return pl.pallas_call(
        functools.partial(_attn_stats_kernel, hd=hd),
        out_shape=jax.ShapeDtypeStruct((b, hd, hd), jnp.bfloat16),
        grid=(b, nt),
        in_specs=[pl.BlockSpec((tn, 2 * hd), lambda i, j: (i * nt + j, 0)),
                  pl.BlockSpec((hd, hd), lambda i, j: (0, 0)),
                  pl.BlockSpec((hd, hd), lambda i, j: (0, 0))],
        out_specs=pl.BlockSpec((None, hd, hd), lambda i, j: (i, 0, 0)),
        scratch_shapes=[pltpu.VMEM((hd, hd), jnp.float32),
                        pltpu.VMEM((1, hd), jnp.float32),
                        pltpu.VMEM((1, hd), jnp.float32)],
        compiler_params=_cparams(("parallel", "arbitrary")),
    )(qk, smat, bmat)


# --------------------------------------------------------------------------
# Kernel: attention pass 2 — out[n, i] = sum_j v[n, j] * attn[i, j]
# (tiled over n; both grid axes parallel -> uses both v7x TensorCores).
# --------------------------------------------------------------------------
def _attn_apply_kernel(v_ref, attn_ref, o_ref):
    o_ref[...] = lax.dot_general(v_ref[...], attn_ref[...],
                                 (((1,), (1,)), ((), ())),
                                 preferred_element_type=jnp.float32).astype(o_ref.dtype)


def attn_apply(v, attn, b, n, tn):
    nt = n // tn
    M, hd = v.shape
    return pl.pallas_call(
        _attn_apply_kernel,
        out_shape=jax.ShapeDtypeStruct((M, hd), jnp.bfloat16),
        grid=(b, nt),
        in_specs=[pl.BlockSpec((tn, hd), lambda i, j: (i * nt + j, 0)),
                  pl.BlockSpec((None, hd, hd), lambda i, j: (i, 0, 0))],
        out_specs=pl.BlockSpec((tn, hd), lambda i, j: (i * nt + j, 0)),
        compiler_params=_cparams(("parallel", "parallel")),
    )(v, attn)


# --------------------------------------------------------------------------
# Kernel: generic matmul with optional bias + fused residual adds
#   out = x @ W [+ bias] [+ add_0 + add_1 ...]      (all MXU operands bf16)
# --------------------------------------------------------------------------
def _fused_matmul_kernel(*refs, has_bias, n_adds):
    x_ref, w_ref = refs[0], refs[1]
    o_ref = refs[-1]
    acc = jnp.dot(x_ref[...], w_ref[...], preferred_element_type=jnp.float32)
    idx = 2
    if has_bias:
        acc = acc + refs[idx][...]
        idx += 1
    for _ in range(n_adds):
        acc = acc + refs[idx][...].astype(jnp.float32)
        idx += 1
    o_ref[...] = acc.astype(o_ref.dtype)


def fused_matmul(x, w, tn, bias=None, adds=()):
    M, K = x.shape
    N = w.shape[1]
    in_specs = [pl.BlockSpec((tn, K), lambda i: (i, 0)),
                pl.BlockSpec((K, N), lambda i: (0, 0))]
    args = [x, w]
    if bias is not None:
        in_specs.append(pl.BlockSpec((1, N), lambda i: (0, 0)))
        args.append(bias.reshape(1, N))
    for a in adds:
        in_specs.append(pl.BlockSpec((tn, N), lambda i: (i, 0)))
        args.append(a)
    return pl.pallas_call(
        functools.partial(_fused_matmul_kernel,
                          has_bias=bias is not None, n_adds=len(adds)),
        out_shape=jax.ShapeDtypeStruct((M, N), jnp.bfloat16),
        grid=(M // tn,),
        in_specs=in_specs,
        out_specs=pl.BlockSpec((tn, N), lambda i: (i, 0)),
        compiler_params=_cparams(("parallel",)),
    )(*args)


# --------------------------------------------------------------------------
# Kernel: fused LayerNorm -> 1x1 conv (matmul) -> GDN   (FFN front half)
# --------------------------------------------------------------------------
def _ln_matmul_gdn_kernel(x_ref, g_ref, b_ref, w_ref, gt_ref, beta_ref, o_ref,
                          *, inverse):
    x = x_ref[...].astype(jnp.float32)
    mu = jnp.mean(x, axis=-1, keepdims=True)
    xc = x - mu
    var = jnp.mean(xc * xc, axis=-1, keepdims=True)
    xn = xc * lax.rsqrt(var + 1e-5) * g_ref[...] + b_ref[...]
    y = jnp.dot(xn.astype(jnp.bfloat16), w_ref[...],
                preferred_element_type=jnp.float32)
    norm = jnp.dot((y * y).astype(jnp.bfloat16), gt_ref[...],
                   preferred_element_type=jnp.float32) + beta_ref[...]
    out = y * jnp.sqrt(norm) if inverse else y * lax.rsqrt(norm)
    o_ref[...] = out.astype(o_ref.dtype)


def ln_matmul_gdn(x, ln_g, ln_b, w, g_t, beta, inverse, tn):
    M, C = x.shape
    N = w.shape[1]
    return pl.pallas_call(
        functools.partial(_ln_matmul_gdn_kernel, inverse=inverse),
        out_shape=jax.ShapeDtypeStruct((M, N), jnp.bfloat16),
        grid=(M // tn,),
        in_specs=[pl.BlockSpec((tn, C), lambda i: (i, 0)),
                  pl.BlockSpec((1, C), lambda i: (0, 0)),
                  pl.BlockSpec((1, C), lambda i: (0, 0)),
                  pl.BlockSpec((C, N), lambda i: (0, 0)),
                  pl.BlockSpec((N, N), lambda i: (0, 0)),
                  pl.BlockSpec((1, N), lambda i: (0, 0))],
        out_specs=pl.BlockSpec((tn, N), lambda i: (i, 0)),
        compiler_params=_cparams(("parallel",)),
    )(x, ln_g.reshape(1, C), ln_b.reshape(1, C), w, g_t, beta.reshape(1, N))


# --------------------------------------------------------------------------
# Kernel: depthwise 3x3 conv (padding=1, no bias), channels-last, one image,
# zero-border handled in-kernel (no HBM pad), optional fused GELU / GDN
# epilogue.  Output flattened to [H*W, C] rows.
#   x_ref: [H, W, C],  w_ref: [9, C] (row index = 3*dy + dx)
# --------------------------------------------------------------------------
def _dwconv3x3_kernel(*refs, gelu, gdn, inverse):
    if gdn:
        x_ref, w_ref, gt_ref, beta_ref, o_ref = refs
    else:
        x_ref, w_ref, o_ref = refs
    x = x_ref[...].astype(jnp.float32)
    wt = w_ref[...].astype(jnp.float32)
    H, W, C = x.shape

    # column-shifted planes: planes[dx][y, j] = x[y, j + dx - 1] (zero outside)
    zcol = jnp.zeros((H, 1, C), jnp.float32)
    xm1 = jnp.concatenate([zcol, x[:, :W - 1, :]], axis=1)
    xp1 = jnp.concatenate([x[:, 1:, :], zcol], axis=1)
    planes = (xm1, x, xp1)

    # per-dy partial sums over input rows
    srow = []
    for dy in range(3):
        s = (planes[0] * wt[3 * dy + 0:3 * dy + 1, :]
             + planes[1] * wt[3 * dy + 1:3 * dy + 2, :]
             + planes[2] * wt[3 * dy + 2:3 * dy + 3, :])
        srow.append(s)

    # out[y] = srow0[y-1] + srow1[y] + srow2[y+1] (zero outside)
    zrow = jnp.zeros((1, W, C), jnp.float32)
    top = jnp.concatenate([zrow, srow[0][:H - 1]], axis=0)
    bot = jnp.concatenate([srow[2][1:], zrow], axis=0)
    y = (top + srow[1] + bot).reshape(H * W, C)

    if gelu:
        # TODO(synk): tanh-approx GELU (reference uses exact erf GELU).
        y = 0.5 * y * (1.0 + jnp.tanh(0.7978845608028654
                                      * (y + 0.044715 * y * y * y)))
    if gdn:
        norm = jnp.dot((y * y).astype(jnp.bfloat16), gt_ref[...],
                       preferred_element_type=jnp.float32) + beta_ref[...]
        y = y * jnp.sqrt(norm) if inverse else y * lax.rsqrt(norm)
    o_ref[...] = y.astype(o_ref.dtype)


def dwconv3x3(x, w, gelu=False, gdn=None):
    # x: [b, H, W, C] bf16 ; w: [9, C] f32 ; gdn = (gamma_t [C,C], beta [C], inverse)
    # TODO(synk): tile over H (overlapping row strips) for large images (v7x VMEM).
    b, H, W, C = x.shape
    in_specs = [pl.BlockSpec((None, H, W, C), lambda i: (i, 0, 0, 0)),
                pl.BlockSpec((9, C), lambda i: (0, 0))]
    args = [x, w]
    inverse = False
    if gdn is not None:
        g_t, beta, inverse = gdn
        in_specs += [pl.BlockSpec((C, C), lambda i: (0, 0)),
                     pl.BlockSpec((1, C), lambda i: (0, 0))]
        args += [g_t, beta.reshape(1, C)]
    return pl.pallas_call(
        functools.partial(_dwconv3x3_kernel, gelu=gelu,
                          gdn=gdn is not None, inverse=inverse),
        out_shape=jax.ShapeDtypeStruct((b, H * W, C), jnp.bfloat16),
        grid=(b,),
        in_specs=in_specs,
        out_specs=pl.BlockSpec((None, H * W, C), lambda i: (i, 0, 0)),
        compiler_params=_cparams(("parallel",)),
    )(*args)


# --------------------------------------------------------------------------
# Module forward (thin JAX glue around the fused Pallas kernels)
# --------------------------------------------------------------------------
def msab_forward(x_nchw, params, inverse):
    b, c, h, w = x_nchw.shape
    n = h * w
    M = b * n
    tn = _seq_tile(n)                      # divides n -> no row padding anywhere
    x = jnp.transpose(x_nchw, (0, 2, 3, 1)).reshape(M, c).astype(jnp.bfloat16)

    for blk in params['blocks']:
        p = blk['msa']
        heads, d = p['heads'], p['dim_head']
        hd = heads * d
        assert hd == c, "pos_emb requires dim_head*heads == dim"

        # --- MS_MSA ---
        qk, v = qkv_proj(x, p['wqk'], p['wv'], tn)            # [M,2hd], [M,hd]
        attn = attn_stats(qk, p['scale_mat'], p['bias_mat'], b, n, tn, hd)
        attn_out = attn_apply(v, attn, b, n, tn)              # [M, hd]
        # positional branch: dwconv3x3 (+fused GELU) -> dwconv3x3 on v
        pe = dwconv3x3(v.reshape(b, h, w, c), p['pe_w1'], gelu=True)   # [b,n,c]
        pe = dwconv3x3(pe.reshape(b, h, w, c), p['pe_w2'])             # [b,n,c]
        # proj + bias + pos_emb + block residual fused into one matmul epilogue
        x = fused_matmul(attn_out, p['wp'], tn, bias=p['bp'],
                         adds=(pe.reshape(M, c), x))

        # --- PreNorm(FeedForward) + residual ---
        f = blk['ff']
        hid = f['w1'].shape[1]
        y = ln_matmul_gdn(x, blk['ln_g'], blk['ln_b'],
                          f['w1'], f['g1_t'], f['beta1'], inverse, tn)  # [M, hid]
        y = dwconv3x3(y.reshape(b, h, w, hid), f['dw'],
                      gdn=(f['g2_t'], f['beta2'], inverse))             # [b, n, hid]
        x = fused_matmul(y.reshape(M, hid), f['w2'], tn, adds=(x,))     # [M, c]

    return jnp.transpose(x.reshape(b, h, w, c).astype(jnp.float32), (0, 3, 1, 2))


# --------------------------------------------------------------------------
# Deterministic synthetic parameters
# --------------------------------------------------------------------------
def init_params(key, dim, dim_head, heads, num_blocks):
    hd = dim_head * heads
    hid = dim * 4
    blocks = []
    for bi in range(num_blocks):
        ks = jax.random.split(jax.random.fold_in(key, bi), 12)
        s_in, s_hd, s_hid = dim ** -0.5, hd ** -0.5, hid ** -0.5
        wq = jax.random.normal(ks[0], (dim, hd), jnp.float32) * s_in
        wk = jax.random.normal(ks[1], (dim, hd), jnp.float32) * s_in
        wv = jax.random.normal(ks[2], (dim, hd), jnp.float32) * s_in
        rescale = jnp.ones((heads,), jnp.float32)
        head_id = jnp.arange(hd) // dim_head
        same = head_id[:, None] == head_id[None, :]
        msa = dict(
            heads=heads, dim_head=dim_head,
            wqk=jnp.concatenate([wq, wk], axis=1).astype(jnp.bfloat16),
            wv=wv.astype(jnp.bfloat16),
            scale_mat=jnp.where(same, rescale[head_id][:, None], 0.0).astype(jnp.float32),
            bias_mat=jnp.where(same, 0.0, -1e30).astype(jnp.float32),
            wp=(jax.random.normal(ks[3], (hd, dim), jnp.float32) * s_hd).astype(jnp.bfloat16),
            bp=jax.random.normal(ks[4], (dim,), jnp.float32) * 0.01,
            pe_w1=jax.random.normal(ks[5], (9, dim), jnp.float32) / 3.0,
            pe_w2=jax.random.normal(ks[6], (9, dim), jnp.float32) / 3.0,
        )
        ff = dict(
            w1=(jax.random.normal(ks[7], (dim, hid), jnp.float32) * s_in).astype(jnp.bfloat16),
            g1_t=(0.1 * jnp.eye(hid, dtype=jnp.float32)
                  + 0.001 * jax.random.uniform(ks[8], (hid, hid), jnp.float32)).astype(jnp.bfloat16),
            beta1=jnp.ones((hid,), jnp.float32),
            dw=jax.random.normal(ks[9], (9, hid), jnp.float32) / 3.0,
            g2_t=(0.1 * jnp.eye(hid, dtype=jnp.float32)
                  + 0.001 * jax.random.uniform(ks[10], (hid, hid), jnp.float32)).astype(jnp.bfloat16),
            beta2=jnp.ones((hid,), jnp.float32),
            w2=(jax.random.normal(ks[11], (hid, dim), jnp.float32) * s_hid).astype(jnp.bfloat16),
        )
        blocks.append(dict(msa=msa,
                           ln_g=jnp.ones((dim,), jnp.float32),
                           ln_b=jnp.zeros((dim,), jnp.float32),
                           ff=ff))
    return dict(blocks=blocks)


if __name__ == "__main__":
    key = jax.random.PRNGKey(0)
    b, c, h, w = 2, 16, 16, 16
    dim, dim_head, heads = c, 8, 2           # dim_head * heads == dim
    num_blocks, inverse = 2, False

    params = init_params(jax.random.fold_in(key, 1), dim, dim_head, heads, num_blocks)
    x = jax.random.normal(jax.random.fold_in(key, 2), (b, c, h, w), jnp.float32)

    out = msab_forward(x, params, inverse)
    out = jax.block_until_ready(out)

    assert out.shape == (b, c, h, w)
    assert bool(jnp.all(jnp.isfinite(out)))
    print("KERNEL_OK")
</pallas_src>

<mosaic_0001>
module attributes {stable_mosaic.version = 11 : i64} {
  func.func @_qkv_proj_kernel(%arg0: i32, %arg1: memref<256x16xbf16, #tpu.memory_space<vmem>>, %arg2: memref<16x32xbf16, #tpu.memory_space<vmem>>, %arg3: memref<16x16xbf16, #tpu.memory_space<vmem>>, %arg4: memref<256x32xbf16, #tpu.memory_space<vmem>>, %arg5: memref<256x16xbf16, #tpu.memory_space<vmem>>) attributes {dimension_semantics = [#tpu.dimension_semantics<parallel>], iteration_bounds = array<i64: 2>, scalar_prefetch = 0 : i64, scratch_operands = 0 : i64, tpu.core_type = #tpu.core_type<tc>, window_params = [{transform_indices = @transform_0, window_bounds = array<i64: 256, 16>}, {pipeline_mode = #tpu.pipeline_mode<synchronous>, transform_indices = @transform_1, window_bounds = array<i64: 16, 32>}, {pipeline_mode = #tpu.pipeline_mode<synchronous>, transform_indices = @transform_2, window_bounds = array<i64: 16, 16>}, {transform_indices = @transform_3, window_bounds = array<i64: 256, 32>}, {transform_indices = @transform_4, window_bounds = array<i64: 256, 16>}]} {
    %c0 = arith.constant 0 : index
    %c0_0 = arith.constant 0 : index
    %0 = vector.load %arg1[%c0, %c0_0] : memref<256x16xbf16, #tpu.memory_space<vmem>>, vector<256x16xbf16>
    %c0_1 = arith.constant 0 : index
    %c0_2 = arith.constant 0 : index
    %1 = vector.load %arg2[%c0_1, %c0_2] : memref<16x32xbf16, #tpu.memory_space<vmem>>, vector<16x32xbf16>
    %cst = arith.constant dense<0.000000e+00> : vector<256x32xf32>
    %2 = tpu.matmul %0, %1, %cst {dimension_numbers = #tpu.dot_dimension_numbers<[1], [0], [0], [1], [0, 0, 1, 1], [], []>} : vector<256x16xbf16>, vector<16x32xbf16>, vector<256x32xf32> -> vector<256x32xf32>
    %3 = arith.truncf %2 : vector<256x32xf32> to vector<256x32xbf16>
    %c0_3 = arith.constant 0 : index
    %c0_4 = arith.constant 0 : index
    %4 = vector.load %arg4[%c0_3, %c0_4] : memref<256x32xbf16, #tpu.memory_space<vmem>>, vector<256x32xbf16>
    tpu.vector_store %arg4[%c0_3, %c0_4], %3 {strides = array<i32>} : memref<256x32xbf16, #tpu.memory_space<vmem>>, vector<256x32xbf16>,
    %c0_5 = arith.constant 0 : index
    %c0_6 = arith.constant 0 : index
    %5 = vector.load %arg3[%c0_5, %c0_6] : memref<16x16xbf16, #tpu.memory_space<vmem>>, vector<16x16xbf16>
    %cst_7 = arith.constant dense<0.000000e+00> : vector<256x16xf32>
    %6 = tpu.matmul %0, %5, %cst_7 {dimension_numbers = #tpu.dot_dimension_numbers<[1], [0], [0], [1], [0, 0, 1, 1], [], []>} : vector<256x16xbf16>, vector<16x16xbf16>, vector<256x16xf32> -> vector<256x16xf32>
    %7 = arith.truncf %6 : vector<256x16xf32> to vector<256x16xbf16>
    %c0_8 = arith.constant 0 : index
    %c0_9 = arith.constant 0 : index
    %8 = vector.load %arg5[%c0_8, %c0_9] : memref<256x16xbf16, #tpu.memory_space<vmem>>, vector<256x16xbf16>
    tpu.vector_store %arg5[%c0_8, %c0_9], %7 {strides = array<i32>} : memref<256x16xbf16, #tpu.memory_space<vmem>>, vector<256x16xbf16>,
    return
  }
  func.func @transform_0(%arg0: i32) -> (i32, i32) {
    %c0_i32 = arith.constant 0 : i32
    %c0_i32_0 = arith.constant 0 : i32
    return %arg0, %c0_i32 : i32, i32
  }
  func.func @transform_1(%arg0: i32) -> (i32, i32) {
    %c0_i32 = arith.constant 0 : i32
    %c0_i32_0 = arith.constant 0 : i32
    %c0_i32_1 = arith.constant 0 : i32
    return %c0_i32, %c0_i32_0 : i32, i32
  }
  func.func @transform_2(%arg0: i32) -> (i32, i32) {
    %c0_i32 = arith.constant 0 : i32
    %c0_i32_0 = arith.constant 0 : i32
    %c0_i32_1 = arith.constant 0 : i32
    return %c0_i32, %c0_i32_0 : i32, i32
  }
  func.func @transform_3(%arg0: i32) -> (i32, i32) {
    %c0_i32 = arith.constant 0 : i32
    %c0_i32_0 = arith.constant 0 : i32
    return %arg0, %c0_i32 : i32, i32
  }
  func.func @transform_4(%arg0: i32) -> (i32, i32) {
    %c0_i32 = arith.constant 0 : i32
    %c0_i32_0 = arith.constant 0 : i32
    return %arg0, %c0_i32 : i32, i32
  }
}

</mosaic_0001>

<bundles_post_ra>
// kernel: tpu_custom_call.1
= control target key start
LH: loop header
LB: loop body
LE: loop exit
PB: predicated region body
PF: predicated region fallthrough
CT: control target
= control target key end

     0   :  { %s1479_s15 = smov 0   ;;  %s1692_s0 = inlined_call_operand.vmem [shape: bf16[512,16], index: 0, kind: input, shape index: {}]   ;;  %s1693_s1 = inlined_call_operand.vmem [shape: bf16[16,32], index: 1, kind: input, shape index: {}]   ;;  %s1694_s2 = inlined_call_operand.vmem [shape: bf16[16,16], index: 2, kind: input, shape index: {}]   ;;  %s1695_s3 = inlined_call_operand.vmem [shape: bf16[512,32], index: 3, kind: output, shape index: {0}]   ;;  %s1696_s4 = inlined_call_operand.vmem [shape: bf16[512,16], index: 4, kind: output, shape index: {1}]  }
   0x1 LB: > { %s1127_s16 = sadd.s32 4294967295, %s1452_s15   ;;  %p1131_p0 = scmp.ge.s32.totalorder %s1452_s15, 1  ;;  %s1452_s15 = sphi %s1479_s15, %s15_s15  }
   0x2   : > { %p166_p1 = scmp.lt.s32.totalorder %s1452_s15, 3 }
   0x4   : > { %p167_p2 = pnand %p1131_p0, %p166_p1 }
   0x5   : > { %s1132_s19 = sshll.u32 (!%p167_p2), %s1127_s16, 5 }
   0x6   : > { %170 = sbr.rel (%p167_p2) target bundleno = 275 (0x113), region = 32  ;;  %p198_p3 = scmp.lt.s32.totalorder (!%p167_p2), %s1132_s19, 63 }
   0xb   : > { %v1428_v0 = vld [vmem:[%s1693_s1] sm:$0xff]   ;;  %s1698_s19 = smov (!%p198_p3, %s1132_s19), 63  ;;  %vm336_vm0 = vcmask 130048   ;;  %vm674_vm1 = vcmask 257024   ;;  %vm1004_vm2 = vcmask 125952  }
   0xc   : > { %v1429_v1 = vld [vmem:[%s1694_s2] sm:$0xff]   ;;  %1352 = vmatprep.subr.bf16.mxu0 %v1428_v0  ;;  %s1493_s22 = sshll.u32 %s1698_s19, 2 }
   0xd   : > { %1386 = vmatprep.subr.bf16.mxu1 %v1429_v1  ;;  %1353 = vmatpush3.bf16.msra.mxu0 %v1428_v0  ;;  %s1499_s25 = scalar_lea.vmem %s1692_s0, %s1493_s22  ;;  %s1553_s28 = scalar_lea.vmem %s1695_s3, %s1493_s22 }
   0xe   : > { %1387 = vmatpush3.bf16.msra.mxu1 %v1429_v1  ;;  %v1430_v2 = vld [vmem:[%s1499_s25] sm:$0xff]   ;;  %v1431_v3 = vld [vmem:[%s1499_s25 + $0x8] sm:$0xff]   ;;  %v1432_v4 = vld [vmem:[%s1499_s25 + $0x10] sm:$0xff]   ;;  %s1559_s5 = scalar_lea.vmem %s1696_s4, %s1493_s22 }
   0xf   : > { %1354 = vmatprep.mubr.msk.bf16.mxu0 %vm336_vm0, %v1430_v2  ;;  %1388 = vmatprep.mubr.msk.bf16.mxu1 %vm336_vm0, %v1430_v2  ;;  %v1433_v5 = vld [vmem:[%s1499_s25 + $0x18] sm:$0xff]   ;;  %v1434_v6 = vld [vmem:[%s1499_s25 + $0x20] sm:$0xff]   ;;  %v1435_v7 = vld [vmem:[%s1499_s25 + $0x28] sm:$0xff]  }
  0x10   : > { %1355 = vmatmul.mubr.msk.bf16.vlgmr.msra.gmra.mxu0 %vm336_vm0, %v1431_v3  ;;  %v1436_v8 = vld [vmem:[%s1499_s25 + $0x30] sm:$0xff]   ;;  %v1437_v9 = vld [vmem:[%s1499_s25 + $0x38] sm:$0xff]   ;;  %v1438_v10 = vld [vmem:[%s1499_s25 + $0x40] sm:$0xff]  }
  0x11   : > { %1389 = vmatmul.mubr.msk.bf16.vlgmr.msra.gmra.mxu1 %vm336_vm0, %v1431_v3  ;;  %1358 = vmatprep.mubr.msk.bf16.mxu0 %vm336_vm0, %v1432_v4  ;;  %v1439_v11 = vld [vmem:[%s1499_s25 + $0x48] sm:$0xff]   ;;  %v1440_v12 = vld [vmem:[%s1499_s25 + $0x50] sm:$0xff]   ;;  %v1441_v13 = vld [vmem:[%s1499_s25 + $0x58] sm:$0xff]  }
  0x12   : > { %1392 = vmatprep.mubr.msk.bf16.mxu1 %vm336_vm0, %v1432_v4  ;;  %v1442_v14 = vld [vmem:[%s1499_s25 + $0x60] sm:$0xff]   ;;  %v1443_v15 = vld [vmem:[%s1499_s25 + $0x68] sm:$0xff]   ;;  %v1444_v16 = vld [vmem:[%s1499_s25 + $0x70] sm:$0xff]  }
  0x13   : > { %v1445_v17 = vld [vmem:[%s1499_s25 + $0x78] sm:$0xff]  }
  0x18   : > { %1359 = vmatmul.mubr.msk.bf16.gmra.mxu0 %vm336_vm0, %v1433_v5 }
  0x19   : > { %1393 = vmatmul.mubr.msk.bf16.gmra.mxu1 %vm336_vm0, %v1433_v5  ;;  %1362 = vmatprep.mubr.msk.bf16.mxu0 %vm336_vm0, %v1434_v6 }
  0x1a   : > { %1396 = vmatprep.mubr.msk.bf16.mxu1 %vm336_vm0, %v1434_v6 }
  0x20   : > { %1363 = vmatmul.mubr.msk.bf16.gmra.mxu0 %vm336_vm0, %v1435_v7 }
  0x21   : > { %1397 = vmatmul.mubr.msk.bf16.gmra.mxu1 %vm336_vm0, %v1435_v7  ;;  %1366 = vmatprep.mubr.msk.bf16.mxu0 %vm336_vm0, %v1436_v8 }
  0x22   : > { %1400 = vmatprep.mubr.msk.bf16.mxu1 %vm336_vm0, %v1436_v8 }
  0x28   : > { %1367 = vmatmul.mubr.msk.bf16.gmra.mxu0 %vm336_vm0, %v1437_v9 }
  0x29   : > { %1401 = vmatmul.mubr.msk.bf16.gmra.mxu1 %vm336_vm0, %v1437_v9  ;;  %1370 = vmatprep.mubr.msk.bf16.mxu0 %vm336_vm0, %v1438_v10 }
  0x2a   : > { %1404 = vmatprep.mubr.msk.bf16.mxu1 %vm336_vm0, %v1438_v10 }
  0x30   : > { %1371 = vmatmul.mubr.msk.bf16.gmra.mxu0 %vm336_vm0, %v1439_v11 }
  0x31   : > { %1405 = vmatmul.mubr.msk.bf16.gmra.mxu1 %vm336_vm0, %v1439_v11  ;;  %1374 = vmatprep.mubr.msk.bf16.mxu0 %vm336_vm0, %v1440_v12 }
  0x32   : > { %1408 = vmatprep.mubr.msk.bf16.mxu1 %vm336_vm0, %v1440_v12 }
  0x38   : > { %1375 = vmatmul.mubr.msk.bf16.gmra.mxu0 %vm336_vm0, %v1441_v13 }
  0x39   : > { %1409 = vmatmul.mubr.msk.bf16.gmra.mxu1 %vm336_vm0, %v1441_v13  ;;  %1378 = vmatprep.mubr.msk.bf16.mxu0 %vm336_vm0, %v1442_v14 }
  0x3a   : > { %1412 = vmatprep.mubr.msk.bf16.mxu1 %vm336_vm0, %v1442_v14 }
  0x40   : > { %1379 = vmatmul.mubr.msk.bf16.gmra.mxu0 %vm336_vm0, %v1443_v15 }
  0x41   : > { %1413 = vmatmul.mubr.msk.bf16.gmra.mxu1 %vm336_vm0, %v1443_v15  ;;  %1382 = vmatprep.mubr.msk.bf16.mxu0 %vm336_vm0, %v1444_v16 }
  0x42   : > { %1416 = vmatprep.mubr.msk.bf16.mxu1 %vm336_vm0, %v1444_v16 }
  0x48   : > { %1383 = vmatmul.mubr.msk.bf16.gmra.mxu0 %vm336_vm0, %v1445_v17 }
  0x49   : > { %1417 = vmatmul.mubr.msk.bf16.gmra.mxu1 %vm336_vm0, %v1445_v17 }
  0xd0   : > { %v1356_v18 = vpop.f32.mrf.mxu0 }
  0xd1   : > { %v1390_v19 = vpop.f32.mrf.mxu1  ;;  %v1256_v20 = vpack.c.bf16 %v1356_v18, %v1356_v18 }
  0xd2   : > { %v1288_v21 = vpack.c.bf16 %v1390_v19, %v1390_v19  ;;  %v419_v22 = vpop.f32.mrf.mxu0 }
  0xd3   : > { %v749_v23 = vpop.f32.mrf.mxu1  ;;  %677 = vst.msk [vmem:[%s1553_s28 + $0x8] sm:$0xf] %vm674_vm1, %v1256_v20  ;;  %v1254_v24 = vpack.c.bf16 %v419_v22, %v419_v22 }
  0xd4   : > { %1007 = vst.msk [vmem:[%s1559_s5 + $0x8] sm:$0xf] %vm1004_vm2, %v1288_v21  ;;  %v1286_v25 = vpack.c.bf16 %v749_v23, %v749_v23  ;;  %v1357_v26 = vpop.f32.mrf.mxu0 }
  0xd5   : > { %v1391_v27 = vpop.f32.mrf.mxu1  ;;  %675 = vst.msk [vmem:[%s1553_s28] sm:$0xf] %vm674_vm1, %v1254_v24  ;;  %v1257_v28 = vpack.c.bf16 %v1357_v26, %v1357_v26 }
  0xd6   : > { %1005 = vst.msk [vmem:[%s1559_s5] sm:$0xf] %vm1004_vm2, %v1286_v25  ;;  %v1289_v29 = vpack.c.bf16 %v1391_v27, %v1391_v27  ;;  %v422_v30 = vpop.f32.mrf.mxu0 }
  0xd7   : > { %v752_v31 = vpop.f32.mrf.mxu1  ;;  %678 = vst.msk [vmem:[%s1553_s28 + $0xc] sm:$0xf] %vm674_vm1, %v1257_v28  ;;  %v1255_v32 = vpack.c.bf16 %v422_v30, %v422_v30 }
  0xd8   : > { %1008 = vst.msk [vmem:[%s1559_s5 + $0xc] sm:$0xf] %vm1004_vm2, %v1289_v29  ;;  %v1287_v33 = vpack.c.bf16 %v752_v31, %v752_v31  ;;  %v1360_v34 = vpop.f32.mrf.mxu0 }
  0xd9   : > { %v1394_v35 = vpop.f32.mrf.mxu1  ;;  %676 = vst.msk [vmem:[%s1553_s28 + $0x4] sm:$0xf] %vm674_vm1, %v1255_v32  ;;  %v1260_v36 = vpack.c.bf16 %v1360_v34, %v1360_v34 }
  0xda   : > { %1006 = vst.msk [vmem:[%s1559_s5 + $0x4] sm:$0xf] %vm1004_vm2, %v1287_v33  ;;  %v1292_v37 = vpack.c.bf16 %v1394_v35, %v1394_v35  ;;  %v435_v38 = vpop.f32.mrf.mxu0 }
  0xdb   : > { %v765_v39 = vpop.f32.mrf.mxu1  ;;  %681 = vst.msk [vmem:[%s1553_s28 + $0x18] sm:$0xf] %vm674_vm1, %v1260_v36  ;;  %v1258_v40 = vpack.c.bf16 %v435_v38, %v435_v38 }
  0xdc   : > { %1011 = vst.msk [vmem:[%s1559_s5 + $0x18] sm:$0xf] %vm1004_vm2, %v1292_v37  ;;  %v1290_v41 = vpack.c.bf16 %v765_v39, %v765_v39  ;;  %v1361_v42 = vpop.f32.mrf.mxu0 }
  0xdd   : > { %v1395_v43 = vpop.f32.mrf.mxu1  ;;  %679 = vst.msk [vmem:[%s1553_s28 + $0x10] sm:$0xf] %vm674_vm1, %v1258_v40  ;;  %v1261_v44 = vpack.c.bf16 %v1361_v42, %v1361_v42 }
  0xde   : > { %1009 = vst.msk [vmem:[%s1559_s5 + $0x10] sm:$0xf] %vm1004_vm2, %v1290_v41  ;;  %v1293_v45 = vpack.c.bf16 %v1395_v43, %v1395_v43  ;;  %v438_v46 = vpop.f32.mrf.mxu0 }
  0xdf   : > { %v768_v47 = vpop.f32.mrf.mxu1  ;;  %682 = vst.msk [vmem:[%s1553_s28 + $0x1c] sm:$0xf] %vm674_vm1, %v1261_v44  ;;  %v1259_v48 = vpack.c.bf16 %v438_v46, %v438_v46 }
  0xe0   : > { %1012 = vst.msk [vmem:[%s1559_s5 + $0x1c] sm:$0xf] %vm1004_vm2, %v1293_v45  ;;  %v1291_v49 = vpack.c.bf16 %v768_v47, %v768_v47  ;;  %v1364_v50 = vpop.f32.mrf.mxu0 }
  0xe1   : > { %v1398_v51 = vpop.f32.mrf.mxu1  ;;  %680 = vst.msk [vmem:[%s1553_s28 + $0x14] sm:$0xf] %vm674_vm1, %v1259_v48  ;;  %v1264_v52 = vpack.c.bf16 %v1364_v50, %v1364_v50 }
  0xe2   : > { %1010 = vst.msk [vmem:[%s1559_s5 + $0x14] sm:$0xf] %vm1004_vm2, %v1291_v49  ;;  %v1296_v53 = vpack.c.bf16 %v1398_v51, %v1398_v51  ;;  %v451_v54 = vpop.f32.mrf.mxu0 }
  0xe3   : > { %v781_v55 = vpop.f32.mrf.mxu1  ;;  %685 = vst.msk [vmem:[%s1553_s28 + $0x28] sm:$0xf] %vm674_vm1, %v1264_v52  ;;  %v1262_v56 = vpack.c.bf16 %v451_v54, %v451_v54 }
  0xe4   : > { %1015 = vst.msk [vmem:[%s1559_s5 + $0x28] sm:$0xf] %vm1004_vm2, %v1296_v53  ;;  %v1294_v57 = vpack.c.bf16 %v781_v55, %v781_v55  ;;  %v1365_v58 = vpop.f32.mrf.mxu0 }
  0xe5   : > { %v1399_v59 = vpop.f32.mrf.mxu1  ;;  %683 = vst.msk [vmem:[%s1553_s28 + $0x20] sm:$0xf] %vm674_vm1, %v1262_v56  ;;  %v1265_v60 = vpack.c.bf16 %v1365_v58, %v1365_v58 }
  0xe6   : > { %1013 = vst.msk [vmem:[%s1559_s5 + $0x20] sm:$0xf] %vm1004_vm2, %v1294_v57  ;;  %v1297_v61 = vpack.c.bf16 %v1399_v59, %v1399_v59  ;;  %v454_v62 = vpop.f32.mrf.mxu0 }
  0xe7   : > { %v784_v63 = vpop.f32.mrf.mxu1  ;;  %686 = vst.msk [vmem:[%s1553_s28 + $0x2c] sm:$0xf] %vm674_vm1, %v1265_v60  ;;  %v1263_v0 = vpack.c.bf16 %v454_v62, %v454_v62 }
  0xe8   : > { %1016 = vst.msk [vmem:[%s1559_s5 + $0x2c] sm:$0xf] %vm1004_vm2, %v1297_v61  ;;  %v1295_v1 = vpack.c.bf16 %v784_v63, %v784_v63  ;;  %v1368_v2 = vpop.f32.mrf.mxu0 }
  0xe9   : > { %v1402_v3 = vpop.f32.mrf.mxu1  ;;  %684 = vst.msk [vmem:[%s1553_s28 + $0x24] sm:$0xf] %vm674_vm1, %v1263_v0  ;;  %v1268_v4 = vpack.c.bf16 %v1368_v2, %v1368_v2 }
  0xea   : > { %1014 = vst.msk [vmem:[%s1559_s5 + $0x24] sm:$0xf] %vm1004_vm2, %v1295_v1  ;;  %v1300_v5 = vpack.c.bf16 %v1402_v3, %v1402_v3  ;;  %v467_v6 = vpop.f32.mrf.mxu0 }
  0xeb   : > { %v797_v7 = vpop.f32.mrf.mxu1  ;;  %689 = vst.msk [vmem:[%s1553_s28 + $0x38] sm:$0xf] %vm674_vm1, %v1268_v4  ;;  %v1266_v8 = vpack.c.bf16 %v467_v6, %v467_v6 }
  0xec   : > { %1019 = vst.msk [vmem:[%s1559_s5 + $0x38] sm:$0xf] %vm1004_vm2, %v1300_v5  ;;  %v1298_v9 = vpack.c.bf16 %v797_v7, %v797_v7  ;;  %v1369_v10 = vpop.f32.mrf.mxu0 }
  0xed   : > { %v1403_v11 = vpop.f32.mrf.mxu1  ;;  %687 = vst.msk [vmem:[%s1553_s28 + $0x30] sm:$0xf] %vm674_vm1, %v1266_v8  ;;  %v1269_v12 = vpack.c.bf16 %v1369_v10, %v1369_v10 }
  0xee   : > { %1017 = vst.msk [vmem:[%s1559_s5 + $0x30] sm:$0xf] %vm1004_vm2, %v1298_v9  ;;  %v1301_v13 = vpack.c.bf16 %v1403_v11, %v1403_v11  ;;  %v470_v14 = vpop.f32.mrf.mxu0 }
  0xef   : > { %v800_v15 = vpop.f32.mrf.mxu1  ;;  %690 = vst.msk [vmem:[%s1553_s28 + $0x3c] sm:$0xf] %vm674_vm1, %v1269_v12  ;;  %v1267_v16 = vpack.c.bf16 %v470_v14, %v470_v14 }
  0xf0   : > { %1020 = vst.msk [vmem:[%s1559_s5 + $0x3c] sm:$0xf] %vm1004_vm2, %v1301_v13  ;;  %v1299_v17 = vpack.c.bf16 %v800_v15, %v800_v15  ;;  %v1372_v18 = vpop.f32.mrf.mxu0 }
  0xf1   : > { %v1406_v19 = vpop.f32.mrf.mxu1  ;;  %688 = vst.msk [vmem:[%s1553_s28 + $0x34] sm:$0xf] %vm674_vm1, %v1267_v16  ;;  %v1272_v20 = vpack.c.bf16 %v1372_v18, %v1372_v18 }
  0xf2   : > { %1018 = vst.msk [vmem:[%s1559_s5 + $0x34] sm:$0xf] %vm1004_vm2, %v1299_v17  ;;  %v1304_v21 = vpack.c.bf16 %v1406_v19, %v1406_v19  ;;  %v483_v22 = vpop.f32.mrf.mxu0 }
  0xf3   : > { %v813_v23 = vpop.f32.mrf.mxu1  ;;  %693 = vst.msk [vmem:[%s1553_s28 + $0x48] sm:$0xf] %vm674_vm1, %v1272_v20  ;;  %v1270_v24 = vpack.c.bf16 %v483_v22, %v483_v22 }
  0xf4   : > { %1023 = vst.msk [vmem:[%s1559_s5 + $0x48] sm:$0xf] %vm1004_vm2, %v1304_v21  ;;  %v1302_v25 = vpack.c.bf16 %v813_v23, %v813_v23  ;;  %v1373_v26 = vpop.f32.mrf.mxu0 }
  0xf5   : > { %v1407_v27 = vpop.f32.mrf.mxu1  ;;  %691 = vst.msk [vmem:[%s1553_s28 + $0x40] sm:$0xf] %vm674_vm1, %v1270_v24  ;;  %v1273_v28 = vpack.c.bf16 %v1373_v26, %v1373_v26 }
  0xf6   : > { %1021 = vst.msk [vmem:[%s1559_s5 + $0x40] sm:$0xf] %vm1004_vm2, %v1302_v25  ;;  %v1305_v29 = vpack.c.bf16 %v1407_v27, %v1407_v27  ;;  %v486_v30 = vpop.f32.mrf.mxu0 }
  0xf7   : > { %v816_v31 = vpop.f32.mrf.mxu1  ;;  %694 = vst.msk [vmem:[%s1553_s28 + $0x4c] sm:$0xf] %vm674_vm1, %v1273_v28  ;;  %v1271_v32 = vpack.c.bf16 %v486_v30, %v486_v30 }
  0xf8   : > { %1024 = vst.msk [vmem:[%s1559_s5 + $0x4c] sm:$0xf] %vm1004_vm2, %v1305_v29  ;;  %v1303_v33 = vpack.c.bf16 %v816_v31, %v816_v31  ;;  %v1376_v34 = vpop.f32.mrf.mxu0 }
  0xf9   : > { %v1410_v35 = vpop.f32.mrf.mxu1  ;;  %692 = vst.msk [vmem:[%s1553_s28 + $0x44] sm:$0xf] %vm674_vm1, %v1271_v32  ;;  %v1276_v36 = vpack.c.bf16 %v1376_v34, %v1376_v34 }
  0xfa   : > { %1022 = vst.msk [vmem:[%s1559_s5 + $0x44] sm:$0xf] %vm1004_vm2, %v1303_v33  ;;  %v1308_v37 = vpack.c.bf16 %v1410_v35, %v1410_v35  ;;  %v499_v38 = vpop.f32.mrf.mxu0 }
  0xfb   : > { %v829_v39 = vpop.f32.mrf.mxu1  ;;  %697 = vst.msk [vmem:[%s1553_s28 + $0x58] sm:$0xf] %vm674_vm1, %v1276_v36  ;;  %v1274_v40 = vpack.c.bf16 %v499_v38, %v499_v38 }
  0xfc   : > { %1027 = vst.msk [vmem:[%s1559_s5 + $0x58] sm:$0xf] %vm1004_vm2, %v1308_v37  ;;  %v1306_v41 = vpack.c.bf16 %v829_v39, %v829_v39  ;;  %v1377_v42 = vpop.f32.mrf.mxu0 }
  0xfd   : > { %v1411_v43 = vpop.f32.mrf.mxu1  ;;  %695 = vst.msk [vmem:[%s1553_s28 + $0x50] sm:$0xf] %vm674_vm1, %v1274_v40  ;;  %v1277_v44 = vpack.c.bf16 %v1377_v42, %v1377_v42 }
  0xfe   : > { %1025 = vst.msk [vmem:[%s1559_s5 + $0x50] sm:$0xf] %vm1004_vm2, %v1306_v41  ;;  %v1309_v45 = vpack.c.bf16 %v1411_v43, %v1411_v43  ;;  %v502_v46 = vpop.f32.mrf.mxu0 }
  0xff   : > { %v832_v47 = vpop.f32.mrf.mxu1  ;;  %698 = vst.msk [vmem:[%s1553_s28 + $0x5c] sm:$0xf] %vm674_vm1, %v1277_v44  ;;  %v1275_v48 = vpack.c.bf16 %v502_v46, %v502_v46 }
 0x100   : > { %1028 = vst.msk [vmem:[%s1559_s5 + $0x5c] sm:$0xf] %vm1004_vm2, %v1309_v45  ;;  %v1307_v49 = vpack.c.bf16 %v832_v47, %v832_v47  ;;  %v1380_v50 = vpop.f32.mrf.mxu0 }
 0x101   : > { %v1414_v51 = vpop.f32.mrf.mxu1  ;;  %696 = vst.msk [vmem:[%s1553_s28 + $0x54] sm:$0xf] %vm674_vm1, %v1275_v48  ;;  %v1280_v52 = vpack.c.bf16 %v1380_v50, %v1380_v50 }
 0x102   : > { %1026 = vst.msk [vmem:[%s1559_s5 + $0x54] sm:$0xf] %vm1004_vm2, %v1307_v49  ;;  %v1312_v53 = vpack.c.bf16 %v1414_v51, %v1414_v51  ;;  %v515_v54 = vpop.f32.mrf.mxu0 }
 0x103   : > { %v845_v55 = vpop.f32.mrf.mxu1  ;;  %701 = vst.msk [vmem:[%s1553_s28 + $0x68] sm:$0xf] %vm674_vm1, %v1280_v52  ;;  %v1278_v56 = vpack.c.bf16 %v515_v54, %v515_v54 }
 0x104   : > { %1031 = vst.msk [vmem:[%s1559_s5 + $0x68] sm:$0xf] %vm1004_vm2, %v1312_v53  ;;  %v1310_v57 = vpack.c.bf16 %v845_v55, %v845_v55  ;;  %v1381_v58 = vpop.f32.mrf.mxu0 }
 0x105   : > { %v1415_v59 = vpop.f32.mrf.mxu1  ;;  %699 = vst.msk [vmem:[%s1553_s28 + $0x60] sm:$0xf] %vm674_vm1, %v1278_v56  ;;  %v1281_v60 = vpack.c.bf16 %v1381_v58, %v1381_v58 }
 0x106   : > { %1029 = vst.msk [vmem:[%s1559_s5 + $0x60] sm:$0xf] %vm1004_vm2, %v1310_v57  ;;  %v1313_v61 = vpack.c.bf16 %v1415_v59, %v1415_v59  ;;  %v518_v62 = vpop.f32.mrf.mxu0 }
 0x107   : > { %v848_v63 = vpop.f32.mrf.mxu1  ;;  %702 = vst.msk [vmem:[%s1553_s28 + $0x6c] sm:$0xf] %vm674_vm1, %v1281_v60  ;;  %v1279_v0 = vpack.c.bf16 %v518_v62, %v518_v62 }
 0x108   : > { %1032 = vst.msk [vmem:[%s1559_s5 + $0x6c] sm:$0xf] %vm1004_vm2, %v1313_v61  ;;  %v1311_v1 = vpack.c.bf16 %v848_v63, %v848_v63  ;;  %v1384_v2 = vpop.f32.mrf.mxu0 }
 0x109   : > { %v1418_v3 = vpop.f32.mrf.mxu1  ;;  %700 = vst.msk [vmem:[%s1553_s28 + $0x64] sm:$0xf] %vm674_vm1, %v1279_v0  ;;  %v1284_v4 = vpack.c.bf16 %v1384_v2, %v1384_v2 }
 0x10a   : > { %1030 = vst.msk [vmem:[%s1559_s5 + $0x64] sm:$0xf] %vm1004_vm2, %v1311_v1  ;;  %v1316_v5 = vpack.c.bf16 %v1418_v3, %v1418_v3  ;;  %v531_v6 = vpop.f32.mrf.mxu0 }
 0x10b   : > { %v861_v7 = vpop.f32.mrf.mxu1  ;;  %705 = vst.msk [vmem:[%s1553_s28 + $0x78] sm:$0xf] %vm674_vm1, %v1284_v4  ;;  %v1282_v8 = vpack.c.bf16 %v531_v6, %v531_v6 }
 0x10c   : > { %1035 = vst.msk [vmem:[%s1559_s5 + $0x78] sm:$0xf] %vm1004_vm2, %v1316_v5  ;;  %v1314_v9 = vpack.c.bf16 %v861_v7, %v861_v7  ;;  %v1385_v10 = vpop.f32.mrf.mxu0 }
 0x10d   : > { %v1419_v11 = vpop.f32.mrf.mxu1  ;;  %703 = vst.msk [vmem:[%s1553_s28 + $0x70] sm:$0xf] %vm674_vm1, %v1282_v8  ;;  %v1285_v12 = vpack.c.bf16 %v1385_v10, %v1385_v10 }
 0x10e   : > { %1033 = vst.msk [vmem:[%s1559_s5 + $0x70] sm:$0xf] %vm1004_vm2, %v1314_v9  ;;  %v1317_v13 = vpack.c.bf16 %v1419_v11, %v1419_v11  ;;  %v534_v14 = vpop.f32.mrf.mxu0 }
 0x10f   : > { %v864_v15 = vpop.f32.mrf.mxu1  ;;  %706 = vst.msk [vmem:[%s1553_s28 + $0x7c] sm:$0xf] %vm674_vm1, %v1285_v12  ;;  %v1283_v16 = vpack.c.bf16 %v534_v14, %v534_v14 }
 0x110   : > { %1036 = vst.msk [vmem:[%s1559_s5 + $0x7c] sm:$0xf] %vm1004_vm2, %v1317_v13  ;;  %v1315_v17 = vpack.c.bf16 %v864_v15, %v864_v15 }
 0x111   : > { %704 = vst.msk [vmem:[%s1553_s28 + $0x74] sm:$0xf] %vm674_vm1, %v1283_v16 }
 0x112   : > { %1034 = vst.msk [vmem:[%s1559_s5 + $0x74] sm:$0xf] %vm1004_vm2, %v1315_v17 }
 0x113 PF: > { %s15_s15 = sadd.s32 1, %s1452_s15  }
 0x114   : > { %p12_p4 = scmp.ge.s32.totalorder %s15_s15, 4  }
 0x116   :  { %14 = sbr.rel (!%p12_p4) target bundleno = 1 (0x1), region = 74 }

</bundles_post_ra>
